<compile_context>
chip_gen: v7x
topology: tpu7x:2x2x1
jax: 0.10.0
libtpu: 0.0.40
codegen_flags: <defaults>
</compile_context>

<pallas_src>
import functools

import jax
import jax.numpy as jnp
from jax.experimental import pallas as pl
from jax.experimental.pallas import tpu as pltpu


def _elu(x):
    # ELU(alpha=1): x if x > 0 else exp(x) - 1
    return jnp.where(x > 0, x, jnp.exp(jnp.minimum(x, 0.0)) - 1.0)


# --------------------------------------------------------------------------- #
# Fused kernel: 3x (Pad -> Conv1d(K, dil d) -> ELU -> Conv1d(1); x + ELU(y))
#               then Pad -> Conv1d(C -> W, kernel=2S, stride=S) -> ELU
# --------------------------------------------------------------------------- #
def _encoder_block_kernel(x_ref,
                          w1a_ref, b1a_ref, w2a_ref, b2a_ref,
                          w1b_ref, b1b_ref, w2b_ref, b2b_ref,
                          w1c_ref, b1c_ref, w2c_ref, b2c_ref,
                          wo_ref, bo_ref,
                          o_ref,
                          pad_ref,
                          *, K, dilations, S, T, To, base):
    # Zero the halo buffer once; only rows [base, base+T) are ever rewritten,
    # so the halo stays zero across all layers (this IS the Pad op).
    pad_ref[...] = jnp.zeros(pad_ref.shape, jnp.float32)
    pad_ref[base:base + T, :] = x_ref[...].astype(jnp.float32)

    def residual_unit(w1_ref, b1_ref, w2_ref, b2_ref, d):
        left = (d * (K - 1)) // 2            # Pad: left = pad // 2
        # im2col: one (T, K*C) operand -> single MXU matmul, contraction K*C.
        cols = jnp.concatenate(
            [pad_ref[base - left + k * d: base - left + k * d + T, :]
             for k in range(K)], axis=-1)
        h = jnp.dot(cols, w1_ref[...], preferred_element_type=jnp.float32)
        h = _elu(h + b1_ref[...])
        y = jnp.dot(h, w2_ref[...], preferred_element_type=jnp.float32) + b2_ref[...]
        # Residual update in place; halo rows remain untouched (zero).
        pad_ref[base:base + T, :] = pad_ref[base:base + T, :] + _elu(y)

    residual_unit(w1a_ref, b1a_ref, w2a_ref, b2a_ref, dilations[0])
    residual_unit(w1b_ref, b1b_ref, w2b_ref, b2b_ref, dilations[1])
    residual_unit(w1c_ref, b1c_ref, w2c_ref, b2c_ref, dilations[2])

    # Output strided conv: out[t] = sum_k x_pad[t*S + k] @ wo[k] + bo, then ELU.
    left_o = (2 * S - 1) // 2                # = S - 1
    cols = jnp.concatenate(
        [pad_ref[pl.ds(base - left_o + k, To, stride=S), :]
         for k in range(2 * S)], axis=-1)    # (To, 2S*C)
    y = jnp.dot(cols, wo_ref[...], preferred_element_type=jnp.float32) + bo_ref[...]
    o_ref[...] = _elu(y).astype(o_ref.dtype)


def soundstream_encoder_block(x_bct, params, *, stride, kernel_size=7,
                              dilations=(1, 3, 9)):
    """x_bct: (B, width//2, T) float32 in PyTorch NCL convention.
    Returns (B, width, T_out) like the PyTorch module."""
    # TODO(synk): FiLM conditioning branch (film_conditioning=True) not
    # implemented; this matches the default config where self.film is None.
    B, C, T = x_bct.shape
    K = kernel_size
    S = stride
    To = (T - 1) // S + 1                    # PyTorch conv output length
    wo, bo = params["out"]
    W = wo.shape[-1]

    # In-kernel padding geometry: activation lives at rows [base, base+T) of a
    # zeroed halo buffer; base is 8-aligned so resident reads/writes of the
    # activation stay sublane-aligned.
    lefts = [(d * (K - 1)) // 2 for d in dilations] + [(2 * S - 1) // 2]
    rights = [d * (K - 1) - (d * (K - 1)) // 2 for d in dilations]
    base = -(-max(lefts) // 8) * 8
    need = max([T + r for r in rights] + [To * S + 1])
    Tpad = base + (-(-need // 8) * 8)

    x_btc = jnp.transpose(x_bct, (0, 2, 1))  # NCL -> (B, T, C) channels-last

    args = [x_btc]
    in_specs = [pl.BlockSpec((None, T, C), lambda b: (b, 0, 0))]
    for (w1, b1, w2, b2) in params["res"]:
        args += [w1.reshape(K * C, C), b1, w2, b2]      # im2col weight layout
        in_specs += [
            pl.BlockSpec((K * C, C), lambda b: (0, 0)),
            pl.BlockSpec((1, C), lambda b: (0, 0)),
            pl.BlockSpec((C, C), lambda b: (0, 0)),
            pl.BlockSpec((1, C), lambda b: (0, 0)),
        ]
    args += [wo.reshape(2 * S * C, W), bo]
    in_specs += [pl.BlockSpec((2 * S * C, W), lambda b: (0, 0)),
                 pl.BlockSpec((1, W), lambda b: (0, 0))]

    # Scoped-VMEM budget: double-buffered in/out blocks + halo scratch +
    # weights + im2col temporaries, with headroom, clamped to chip limits.
    f32 = 4
    weight_bytes = sum(int(a.size) for a in args[1:]) * f32
    work_bytes = (2 * (T * C + To * W) + Tpad * C
                  + 2 * T * K * C + 2 * To * 2 * S * C) * f32 + 2 * weight_bytes
    vmem_limit = int(min(120 * 2 ** 20, max(4 * work_bytes, 16 * 2 ** 20)))

    kern = functools.partial(_encoder_block_kernel, K=K,
                             dilations=tuple(dilations), S=S, T=T, To=To,
                             base=base)
    y = pl.pallas_call(
        kern,
        out_shape=jax.ShapeDtypeStruct((B, To, W), x_bct.dtype),
        grid=(B,),
        in_specs=in_specs,
        out_specs=pl.BlockSpec((None, To, W), lambda b: (b, 0, 0)),
        scratch_shapes=[pltpu.VMEM((Tpad, C), jnp.float32)],
        compiler_params=pltpu.CompilerParams(
            dimension_semantics=("parallel",),
            vmem_limit_bytes=vmem_limit),
    )(*args)
    # TODO(synk): for long T add a time-tiling grid axis (fused halo = sum of
    # per-layer receptive fields, ~82 rows here) so the working set fits v7x's
    # 64 MiB VMEM and pipelines across its two TensorCores.
    # TODO(synk): optionally cast matmul operands to bf16 (f32 accumulate) to
    # halve HBM/VMEM traffic; requires re-validating tolerances.
    return jnp.transpose(y, (0, 2, 1))       # -> (B, width, T_out)


# --------------------------------------------------------------------------- #
# Pure-JAX reference (same padding convention) for validation.
# --------------------------------------------------------------------------- #
def _ref_conv1d(x_bct, w_oik, b_o, *, stride=1, dilation=1, pad=(0, 0)):
    y = jax.lax.conv_general_dilated(
        x_bct, w_oik, window_strides=(stride,), padding=[pad],
        rhs_dilation=(dilation,), dimension_numbers=("NCH", "OIH", "NCH"),
        precision=jax.lax.Precision.HIGHEST)
    return y + b_o[None, :, None]


def ref_forward(x_bct, params, *, stride, kernel_size):
    x = x_bct
    for (w1, b1, w2, b2), d in zip(params["res"], (1, 3, 9)):
        p = d * (kernel_size - 1)
        w1t = jnp.transpose(w1, (2, 1, 0))             # (K,Ci,Co) -> (Co,Ci,K)
        w2t = jnp.transpose(w2, (1, 0))[:, :, None]    # (Ci,Co)   -> (Co,Ci,1)
        y = _ref_conv1d(x, w1t, b1[0], dilation=d, pad=(p // 2, p - p // 2))
        y = _elu(y)
        y = _ref_conv1d(y, w2t, b2[0])
        x = x + _elu(y)
    wo, bo = params["out"]
    p = 2 * stride - 1
    wot = jnp.transpose(wo, (2, 1, 0))
    y = _ref_conv1d(x, wot, bo[0], stride=stride, pad=(p // 2, p - p // 2))
    return _elu(y)


if __name__ == "__main__":
    B, width, stride, T, K = 2, 8, 2, 16, 7
    C = width // 2

    key = jax.random.PRNGKey(0)
    res_params = []
    for _ in range(3):
        key, k1, k2, k3, k4 = jax.random.split(key, 5)
        res_params.append((
            0.2 * jax.random.normal(k1, (K, C, C), jnp.float32),    # w1[k,ci,co]
            0.1 * jax.random.normal(k2, (1, C), jnp.float32),       # b1
            0.2 * jax.random.normal(k3, (C, C), jnp.float32),       # w2[ci,co]
            0.1 * jax.random.normal(k4, (1, C), jnp.float32),       # b2
        ))
    key, kw, kb, kx = jax.random.split(key, 4)
    wo = 0.2 * jax.random.normal(kw, (2 * stride, C, width), jnp.float32)
    bo = 0.1 * jax.random.normal(kb, (1, width), jnp.float32)
    params = {"res": res_params, "out": (wo, bo)}

    x = jax.random.normal(kx, (B, C, T), jnp.float32)

    out = soundstream_encoder_block(x, params, stride=stride, kernel_size=K)
    out = jax.block_until_ready(out)

    ref = ref_forward(x, params, stride=stride, kernel_size=K)
    assert out.shape == (B, width, T // stride), out.shape
    max_err = float(jnp.max(jnp.abs(out - ref)))
    assert jnp.allclose(out, ref, atol=1e-3, rtol=1e-3), max_err

    print("KERNEL_OK")
</pallas_src>

<mosaic_0001>
module attributes {stable_mosaic.version = 11 : i64} {
  func.func @_encoder_block_kernel(%arg0: i32, %arg1: memref<1x16x4xf32, #tpu.memory_space<vmem>>, %arg2: memref<28x4xf32, #tpu.memory_space<vmem>>, %arg3: memref<1x4xf32, #tpu.memory_space<vmem>>, %arg4: memref<4x4xf32, #tpu.memory_space<vmem>>, %arg5: memref<1x4xf32, #tpu.memory_space<vmem>>, %arg6: memref<28x4xf32, #tpu.memory_space<vmem>>, %arg7: memref<1x4xf32, #tpu.memory_space<vmem>>, %arg8: memref<4x4xf32, #tpu.memory_space<vmem>>, %arg9: memref<1x4xf32, #tpu.memory_space<vmem>>, %arg10: memref<28x4xf32, #tpu.memory_space<vmem>>, %arg11: memref<1x4xf32, #tpu.memory_space<vmem>>, %arg12: memref<4x4xf32, #tpu.memory_space<vmem>>, %arg13: memref<1x4xf32, #tpu.memory_space<vmem>>, %arg14: memref<16x8xf32, #tpu.memory_space<vmem>>, %arg15: memref<1x8xf32, #tpu.memory_space<vmem>>, %arg16: memref<1x8x8xf32, #tpu.memory_space<vmem>>, %arg17: memref<80x4xf32, #tpu.memory_space<vmem>>) attributes {dimension_semantics = [#tpu.dimension_semantics<parallel>], iteration_bounds = array<i64: 2>, scalar_prefetch = 0 : i64, scratch_operands = 1 : i64, tpu.core_type = #tpu.core_type<tc>, window_params = [{transform_indices = @transform_0, window_bounds = array<i64: 1, 16, 4>}, {pipeline_mode = #tpu.pipeline_mode<synchronous>, transform_indices = @transform_1, window_bounds = array<i64: 28, 4>}, {pipeline_mode = #tpu.pipeline_mode<synchronous>, transform_indices = @transform_2, window_bounds = array<i64: 1, 4>}, {pipeline_mode = #tpu.pipeline_mode<synchronous>, transform_indices = @transform_3, window_bounds = array<i64: 4, 4>}, {pipeline_mode = #tpu.pipeline_mode<synchronous>, transform_indices = @transform_4, window_bounds = array<i64: 1, 4>}, {pipeline_mode = #tpu.pipeline_mode<synchronous>, transform_indices = @transform_5, window_bounds = array<i64: 28, 4>}, {pipeline_mode = #tpu.pipeline_mode<synchronous>, transform_indices = @transform_6, window_bounds = array<i64: 1, 4>}, {pipeline_mode = #tpu.pipeline_mode<synchronous>, transform_indices = @transform_7, window_bounds = array<i64: 4, 4>}, {pipeline_mode = #tpu.pipeline_mode<synchronous>, transform_indices = @transform_8, window_bounds = array<i64: 1, 4>}, {pipeline_mode = #tpu.pipeline_mode<synchronous>, transform_indices = @transform_9, window_bounds = array<i64: 28, 4>}, {pipeline_mode = #tpu.pipeline_mode<synchronous>, transform_indices = @transform_10, window_bounds = array<i64: 1, 4>}, {pipeline_mode = #tpu.pipeline_mode<synchronous>, transform_indices = @transform_11, window_bounds = array<i64: 4, 4>}, {pipeline_mode = #tpu.pipeline_mode<synchronous>, transform_indices = @transform_12, window_bounds = array<i64: 1, 4>}, {pipeline_mode = #tpu.pipeline_mode<synchronous>, transform_indices = @transform_13, window_bounds = array<i64: 16, 8>}, {pipeline_mode = #tpu.pipeline_mode<synchronous>, transform_indices = @transform_14, window_bounds = array<i64: 1, 8>}, {transform_indices = @transform_15, window_bounds = array<i64: 1, 8, 8>}]} {
    %cst = arith.constant 0.000000e+00 : f32
    %0 = vector.broadcast %cst : f32 to vector<80x4xf32>
    %c0 = arith.constant 0 : index
    %c0_0 = arith.constant 0 : index
    %1 = vector.load %arg17[%c0, %c0_0] : memref<80x4xf32, #tpu.memory_space<vmem>>, vector<80x4xf32>
    tpu.vector_store %arg17[%c0, %c0_0], %0 {strides = array<i32>} : memref<80x4xf32, #tpu.memory_space<vmem>>, vector<80x4xf32>,
    %c0_1 = arith.constant 0 : index
    %c0_2 = arith.constant 0 : index
    %c0_3 = arith.constant 0 : index
    %2 = vector.load %arg1[%c0_1, %c0_2, %c0_3] : memref<1x16x4xf32, #tpu.memory_space<vmem>>, vector<1x16x4xf32>
    %3 = vector.shape_cast %2 : vector<1x16x4xf32> to vector<16x4xf32>
    %c32 = arith.constant 32 : index
    %c0_4 = arith.constant 0 : index
    %4 = vector.load %arg17[%c32, %c0_4] : memref<80x4xf32, #tpu.memory_space<vmem>>, vector<16x4xf32>
    tpu.vector_store %arg17[%c32, %c0_4], %3 {strides = array<i32>} : memref<80x4xf32, #tpu.memory_space<vmem>>, vector<16x4xf32>,
    %c29 = arith.constant 29 : index
    %c0_5 = arith.constant 0 : index
    %5 = vector.load %arg17[%c29, %c0_5] : memref<80x4xf32, #tpu.memory_space<vmem>>, vector<16x4xf32>
    %c30 = arith.constant 30 : index
    %c0_6 = arith.constant 0 : index
    %6 = vector.load %arg17[%c30, %c0_6] : memref<80x4xf32, #tpu.memory_space<vmem>>, vector<16x4xf32>
    %c31 = arith.constant 31 : index
    %c0_7 = arith.constant 0 : index
    %7 = vector.load %arg17[%c31, %c0_7] : memref<80x4xf32, #tpu.memory_space<vmem>>, vector<16x4xf32>
    %c32_8 = arith.constant 32 : index
    %c0_9 = arith.constant 0 : index
    %8 = vector.load %arg17[%c32_8, %c0_9] : memref<80x4xf32, #tpu.memory_space<vmem>>, vector<16x4xf32>
    %c33 = arith.constant 33 : index
    %c0_10 = arith.constant 0 : index
    %9 = vector.load %arg17[%c33, %c0_10] : memref<80x4xf32, #tpu.memory_space<vmem>>, vector<16x4xf32>
    %c34 = arith.constant 34 : index
    %c0_11 = arith.constant 0 : index
    %10 = vector.load %arg17[%c34, %c0_11] : memref<80x4xf32, #tpu.memory_space<vmem>>, vector<16x4xf32>
    %c35 = arith.constant 35 : index
    %c0_12 = arith.constant 0 : index
    %11 = vector.load %arg17[%c35, %c0_12] : memref<80x4xf32, #tpu.memory_space<vmem>>, vector<16x4xf32>
    %12 = tpu.concatenate %5, %6, %7, %8, %9, %10, %11 in 1 : vector<16x4xf32>, vector<16x4xf32>, vector<16x4xf32>, vector<16x4xf32>, vector<16x4xf32>, vector<16x4xf32>, vector<16x4xf32> -> vector<16x28xf32>
    %c0_13 = arith.constant 0 : index
    %c0_14 = arith.constant 0 : index
    %13 = vector.load %arg2[%c0_13, %c0_14] : memref<28x4xf32, #tpu.memory_space<vmem>>, vector<28x4xf32>
    %cst_15 = arith.constant dense<0.000000e+00> : vector<16x4xf32>
    %14 = tpu.matmul %12, %13, %cst_15 {dimension_numbers = #tpu.dot_dimension_numbers<[1], [0], [0], [1], [0, 0, 1, 1], [], []>} : vector<16x28xf32>, vector<28x4xf32>, vector<16x4xf32> -> vector<16x4xf32>
    %c0_16 = arith.constant 0 : index
    %c0_17 = arith.constant 0 : index
    %15 = vector.load %arg3[%c0_16, %c0_17] : memref<1x4xf32, #tpu.memory_space<vmem>>, vector<1x4xf32>
    %16 = vector.broadcast %15 : vector<1x4xf32> to vector<16x4xf32>
    %17 = arith.addf %14, %16 : vector<16x4xf32>
    %cst_18 = arith.constant 0.000000e+00 : f32
    %18 = vector.broadcast %cst_18 : f32 to vector<16x4xf32>
    %19 = arith.cmpf ogt, %17, %18 : vector<16x4xf32>
    %cst_19 = arith.constant 0.000000e+00 : f32
    %20 = vector.broadcast %cst_19 : f32 to vector<16x4xf32>
    %21 = arith.minimumf %17, %20 : vector<16x4xf32>
    %22 = math.exp %21 : vector<16x4xf32>
    %cst_20 = arith.constant 1.000000e+00 : f32
    %23 = vector.broadcast %cst_20 : f32 to vector<16x4xf32>
    %24 = arith.subf %22, %23 : vector<16x4xf32>
    %25 = arith.select %19, %17, %24 : vector<16x4xi1>, vector<16x4xf32>
    %c0_21 = arith.constant 0 : index
    %c0_22 = arith.constant 0 : index
    %26 = vector.load %arg4[%c0_21, %c0_22] : memref<4x4xf32, #tpu.memory_space<vmem>>, vector<4x4xf32>
    %cst_23 = arith.constant dense<0.000000e+00> : vector<16x4xf32>
    %27 = tpu.matmul %25, %26, %cst_23 {dimension_numbers = #tpu.dot_dimension_numbers<[1], [0], [0], [1], [0, 0, 1, 1], [], []>} : vector<16x4xf32>, vector<4x4xf32>, vector<16x4xf32> -> vector<16x4xf32>
    %c0_24 = arith.constant 0 : index
    %c0_25 = arith.constant 0 : index
    %28 = vector.load %arg5[%c0_24, %c0_25] : memref<1x4xf32, #tpu.memory_space<vmem>>, vector<1x4xf32>
    %29 = vector.broadcast %28 : vector<1x4xf32> to vector<16x4xf32>
    %30 = arith.addf %27, %29 : vector<16x4xf32>
    %c32_26 = arith.constant 32 : index
    %c0_27 = arith.constant 0 : index
    %31 = vector.load %arg17[%c32_26, %c0_27] : memref<80x4xf32, #tpu.memory_space<vmem>>, vector<16x4xf32>
    %cst_28 = arith.constant 0.000000e+00 : f32
    %32 = vector.broadcast %cst_28 : f32 to vector<16x4xf32>
    %33 = arith.cmpf ogt, %30, %32 : vector<16x4xf32>
    %cst_29 = arith.constant 0.000000e+00 : f32
    %34 = vector.broadcast %cst_29 : f32 to vector<16x4xf32>
    %35 = arith.minimumf %30, %34 : vector<16x4xf32>
    %36 = math.exp %35 : vector<16x4xf32>
    %cst_30 = arith.constant 1.000000e+00 : f32
    %37 = vector.broadcast %cst_30 : f32 to vector<16x4xf32>
    %38 = arith.subf %36, %37 : vector<16x4xf32>
    %39 = arith.select %33, %30, %38 : vector<16x4xi1>, vector<16x4xf32>
    %40 = arith.addf %31, %39 : vector<16x4xf32>
    %c32_31 = arith.constant 32 : index
    %c0_32 = arith.constant 0 : index
    %41 = vector.load %arg17[%c32_31, %c0_32] : memref<80x4xf32, #tpu.memory_space<vmem>>, vector<16x4xf32>
    tpu.vector_store %arg17[%c32_31, %c0_32], %40 {strides = array<i32>} : memref<80x4xf32, #tpu.memory_space<vmem>>, vector<16x4xf32>,
    %c23 = arith.constant 23 : index
    %c0_33 = arith.constant 0 : index
    %42 = vector.load %arg17[%c23, %c0_33] : memref<80x4xf32, #tpu.memory_space<vmem>>, vector<16x4xf32>
    %c26 = arith.constant 26 : index
    %c0_34 = arith.constant 0 : index
    %43 = vector.load %arg17[%c26, %c0_34] : memref<80x4xf32, #tpu.memory_space<vmem>>, vector<16x4xf32>
    %c29_35 = arith.constant 29 : index
    %c0_36 = arith.constant 0 : index
    %44 = vector.load %arg17[%c29_35, %c0_36] : memref<80x4xf32, #tpu.memory_space<vmem>>, vector<16x4xf32>
    %c32_37 = arith.constant 32 : index
    %c0_38 = arith.constant 0 : index
    %45 = vector.load %arg17[%c32_37, %c0_38] : memref<80x4xf32, #tpu.memory_space<vmem>>, vector<16x4xf32>
    %c35_39 = arith.constant 35 : index
    %c0_40 = arith.constant 0 : index
    %46 = vector.load %arg17[%c35_39, %c0_40] : memref<80x4xf32, #tpu.memory_space<vmem>>, vector<16x4xf32>
    %c38 = arith.constant 38 : index
    %c0_41 = arith.constant 0 : index
    %47 = vector.load %arg17[%c38, %c0_41] : memref<80x4xf32, #tpu.memory_space<vmem>>, vector<16x4xf32>
    %c41 = arith.constant 41 : index
    %c0_42 = arith.constant 0 : index
    %48 = vector.load %arg17[%c41, %c0_42] : memref<80x4xf32, #tpu.memory_space<vmem>>, vector<16x4xf32>
    %49 = tpu.concatenate %42, %43, %44, %45, %46, %47, %48 in 1 : vector<16x4xf32>, vector<16x4xf32>, vector<16x4xf32>, vector<16x4xf32>, vector<16x4xf32>, vector<16x4xf32>, vector<16x4xf32> -> vector<16x28xf32>
    %c0_43 = arith.constant 0 : index
    %c0_44 = arith.constant 0 : index
    %50 = vector.load %arg6[%c0_43, %c0_44] : memref<28x4xf32, #tpu.memory_space<vmem>>, vector<28x4xf32>
    %cst_45 = arith.constant dense<0.000000e+00> : vector<16x4xf32>
    %51 = tpu.matmul %49, %50, %cst_45 {dimension_numbers = #tpu.dot_dimension_numbers<[1], [0], [0], [1], [0, 0, 1, 1], [], []>} : vector<16x28xf32>, vector<28x4xf32>, vector<16x4xf32> -> vector<16x4xf32>
    %c0_46 = arith.constant 0 : index
    %c0_47 = arith.constant 0 : index
    %52 = vector.load %arg7[%c0_46, %c0_47] : memref<1x4xf32, #tpu.memory_space<vmem>>, vector<1x4xf32>
    %53 = vector.broadcast %52 : vector<1x4xf32> to vector<16x4xf32>
    %54 = arith.addf %51, %53 : vector<16x4xf32>
    %cst_48 = arith.constant 0.000000e+00 : f32
    %55 = vector.broadcast %cst_48 : f32 to vector<16x4xf32>
    %56 = arith.cmpf ogt, %54, %55 : vector<16x4xf32>
    %cst_49 = arith.constant 0.000000e+00 : f32
    %57 = vector.broadcast %cst_49 : f32 to vector<16x4xf32>
    %58 = arith.minimumf %54, %57 : vector<16x4xf32>
    %59 = math.exp %58 : vector<16x4xf32>
    %cst_50 = arith.constant 1.000000e+00 : f32
    %60 = vector.broadcast %cst_50 : f32 to vector<16x4xf32>
    %61 = arith.subf %59, %60 : vector<16x4xf32>
    %62 = arith.select %56, %54, %61 : vector<16x4xi1>, vector<16x4xf32>
    %c0_51 = arith.constant 0 : index
    %c0_52 = arith.constant 0 : index
    %63 = vector.load %arg8[%c0_51, %c0_52] : memref<4x4xf32, #tpu.memory_space<vmem>>, vector<4x4xf32>
    %cst_53 = arith.constant dense<0.000000e+00> : vector<16x4xf32>
    %64 = tpu.matmul %62, %63, %cst_53 {dimension_numbers = #tpu.dot_dimension_numbers<[1], [0], [0], [1], [0, 0, 1, 1], [], []>} : vector<16x4xf32>, vector<4x4xf32>, vector<16x4xf32> -> vector<16x4xf32>
    %c0_54 = arith.constant 0 : index
    %c0_55 = arith.constant 0 : index
    %65 = vector.load %arg9[%c0_54, %c0_55] : memref<1x4xf32, #tpu.memory_space<vmem>>, vector<1x4xf32>
    %66 = vector.broadcast %65 : vector<1x4xf32> to vector<16x4xf32>
    %67 = arith.addf %64, %66 : vector<16x4xf32>
    %c32_56 = arith.constant 32 : index
    %c0_57 = arith.constant 0 : index
    %68 = vector.load %arg17[%c32_56, %c0_57] : memref<80x4xf32, #tpu.memory_space<vmem>>, vector<16x4xf32>
    %cst_58 = arith.constant 0.000000e+00 : f32
    %69 = vector.broadcast %cst_58 : f32 to vector<16x4xf32>
    %70 = arith.cmpf ogt, %67, %69 : vector<16x4xf32>
    %cst_59 = arith.constant 0.000000e+00 : f32
    %71 = vector.broadcast %cst_59 : f32 to vector<16x4xf32>
    %72 = arith.minimumf %67, %71 : vector<16x4xf32>
    %73 = math.exp %72 : vector<16x4xf32>
    %cst_60 = arith.constant 1.000000e+00 : f32
    %74 = vector.broadcast %cst_60 : f32 to vector<16x4xf32>
    %75 = arith.subf %73, %74 : vector<16x4xf32>
    %76 = arith.select %70, %67, %75 : vector<16x4xi1>, vector<16x4xf32>
    %77 = arith.addf %68, %76 : vector<16x4xf32>
    %c32_61 = arith.constant 32 : index
    %c0_62 = arith.constant 0 : index
    %78 = vector.load %arg17[%c32_61, %c0_62] : memref<80x4xf32, #tpu.memory_space<vmem>>, vector<16x4xf32>
    tpu.vector_store %arg17[%c32_61, %c0_62], %77 {strides = array<i32>} : memref<80x4xf32, #tpu.memory_space<vmem>>, vector<16x4xf32>,
    %c5 = arith.constant 5 : index
    %c0_63 = arith.constant 0 : index
    %79 = vector.load %arg17[%c5, %c0_63] : memref<80x4xf32, #tpu.memory_space<vmem>>, vector<16x4xf32>
    %c14 = arith.constant 14 : index
    %c0_64 = arith.constant 0 : index
    %80 = vector.load %arg17[%c14, %c0_64] : memref<80x4xf32, #tpu.memory_space<vmem>>, vector<16x4xf32>
    %c23_65 = arith.constant 23 : index
    %c0_66 = arith.constant 0 : index
    %81 = vector.load %arg17[%c23_65, %c0_66] : memref<80x4xf32, #tpu.memory_space<vmem>>, vector<16x4xf32>
    %c32_67 = arith.constant 32 : index
    %c0_68 = arith.constant 0 : index
    %82 = vector.load %arg17[%c32_67, %c0_68] : memref<80x4xf32, #tpu.memory_space<vmem>>, vector<16x4xf32>
    %c41_69 = arith.constant 41 : index
    %c0_70 = arith.constant 0 : index
    %83 = vector.load %arg17[%c41_69, %c0_70] : memref<80x4xf32, #tpu.memory_space<vmem>>, vector<16x4xf32>
    %c50 = arith.constant 50 : index
    %c0_71 = arith.constant 0 : index
    %84 = vector.load %arg17[%c50, %c0_71] : memref<80x4xf32, #tpu.memory_space<vmem>>, vector<16x4xf32>
    %c59 = arith.constant 59 : index
    %c0_72 = arith.constant 0 : index
    %85 = vector.load %arg17[%c59, %c0_72] : memref<80x4xf32, #tpu.memory_space<vmem>>, vector<16x4xf32>
    %86 = tpu.concatenate %79, %80, %81, %82, %83, %84, %85 in 1 : vector<16x4xf32>, vector<16x4xf32>, vector<16x4xf32>, vector<16x4xf32>, vector<16x4xf32>, vector<16x4xf32>, vector<16x4xf32> -> vector<16x28xf32>
    %c0_73 = arith.constant 0 : index
    %c0_74 = arith.constant 0 : index
    %87 = vector.load %arg10[%c0_73, %c0_74] : memref<28x4xf32, #tpu.memory_space<vmem>>, vector<28x4xf32>
    %cst_75 = arith.constant dense<0.000000e+00> : vector<16x4xf32>
    %88 = tpu.matmul %86, %87, %cst_75 {dimension_numbers = #tpu.dot_dimension_numbers<[1], [0], [0], [1], [0, 0, 1, 1], [], []>} : vector<16x28xf32>, vector<28x4xf32>, vector<16x4xf32> -> vector<16x4xf32>
    %c0_76 = arith.constant 0 : index
    %c0_77 = arith.constant 0 : index
    %89 = vector.load %arg11[%c0_76, %c0_77] : memref<1x4xf32, #tpu.memory_space<vmem>>, vector<1x4xf32>
    %90 = vector.broadcast %89 : vector<1x4xf32> to vector<16x4xf32>
    %91 = arith.addf %88, %90 : vector<16x4xf32>
    %cst_78 = arith.constant 0.000000e+00 : f32
    %92 = vector.broadcast %cst_78 : f32 to vector<16x4xf32>
    %93 = arith.cmpf ogt, %91, %92 : vector<16x4xf32>
    %cst_79 = arith.constant 0.000000e+00 : f32
    %94 = vector.broadcast %cst_79 : f32 to vector<16x4xf32>
    %95 = arith.minimumf %91, %94 : vector<16x4xf32>
    %96 = math.exp %95 : vector<16x4xf32>
    %cst_80 = arith.constant 1.000000e+00 : f32
    %97 = vector.broadcast %cst_80 : f32 to vector<16x4xf32>
    %98 = arith.subf %96, %97 : vector<16x4xf32>
    %99 = arith.select %93, %91, %98 : vector<16x4xi1>, vector<16x4xf32>
    %c0_81 = arith.constant 0 : index
    %c0_82 = arith.constant 0 : index
    %100 = vector.load %arg12[%c0_81, %c0_82] : memref<4x4xf32, #tpu.memory_space<vmem>>, vector<4x4xf32>
    %cst_83 = arith.constant dense<0.000000e+00> : vector<16x4xf32>
    %101 = tpu.matmul %99, %100, %cst_83 {dimension_numbers = #tpu.dot_dimension_numbers<[1], [0], [0], [1], [0, 0, 1, 1], [], []>} : vector<16x4xf32>, vector<4x4xf32>, vector<16x4xf32> -> vector<16x4xf32>
    %c0_84 = arith.constant 0 : index
    %c0_85 = arith.constant 0 : index
    %102 = vector.load %arg13[%c0_84, %c0_85] : memref<1x4xf32, #tpu.memory_space<vmem>>, vector<1x4xf32>
    %103 = vector.broadcast %102 : vector<1x4xf32> to vector<16x4xf32>
    %104 = arith.addf %101, %103 : vector<16x4xf32>
    %c32_86 = arith.constant 32 : index
    %c0_87 = arith.constant 0 : index
    %105 = vector.load %arg17[%c32_86, %c0_87] : memref<80x4xf32, #tpu.memory_space<vmem>>, vector<16x4xf32>
    %cst_88 = arith.constant 0.000000e+00 : f32
    %106 = vector.broadcast %cst_88 : f32 to vector<16x4xf32>
    %107 = arith.cmpf ogt, %104, %106 : vector<16x4xf32>
    %cst_89 = arith.constant 0.000000e+00 : f32
    %108 = vector.broadcast %cst_89 : f32 to vector<16x4xf32>
    %109 = arith.minimumf %104, %108 : vector<16x4xf32>
    %110 = math.exp %109 : vector<16x4xf32>
    %cst_90 = arith.constant 1.000000e+00 : f32
    %111 = vector.broadcast %cst_90 : f32 to vector<16x4xf32>
    %112 = arith.subf %110, %111 : vector<16x4xf32>
    %113 = arith.select %107, %104, %112 : vector<16x4xi1>, vector<16x4xf32>
    %114 = arith.addf %105, %113 : vector<16x4xf32>
    %c32_91 = arith.constant 32 : index
    %c0_92 = arith.constant 0 : index
    %115 = vector.load %arg17[%c32_91, %c0_92] : memref<80x4xf32, #tpu.memory_space<vmem>>, vector<16x4xf32>
    tpu.vector_store %arg17[%c32_91, %c0_92], %114 {strides = array<i32>} : memref<80x4xf32, #tpu.memory_space<vmem>>, vector<16x4xf32>,
    %c31_93 = arith.constant 31 : index
    %c0_94 = arith.constant 0 : index
    %116 = tpu.strided_load %arg17[%c31_93, %c0_94] {strides = array<i32: 2, 1>} : memref<80x4xf32, #tpu.memory_space<vmem>>, vector<8x4xf32>
    %c32_95 = arith.constant 32 : index
    %c0_96 = arith.constant 0 : index
    %117 = tpu.strided_load %arg17[%c32_95, %c0_96] {strides = array<i32: 2, 1>} : memref<80x4xf32, #tpu.memory_space<vmem>>, vector<8x4xf32>
    %c33_97 = arith.constant 33 : index
    %c0_98 = arith.constant 0 : index
    %118 = tpu.strided_load %arg17[%c33_97, %c0_98] {strides = array<i32: 2, 1>} : memref<80x4xf32, #tpu.memory_space<vmem>>, vector<8x4xf32>
    %c34_99 = arith.constant 34 : index
    %c0_100 = arith.constant 0 : index
    %119 = tpu.strided_load %arg17[%c34_99, %c0_100] {strides = array<i32: 2, 1>} : memref<80x4xf32, #tpu.memory_space<vmem>>, vector<8x4xf32>
    %120 = tpu.concatenate %116, %117, %118, %119 in 1 : vector<8x4xf32>, vector<8x4xf32>, vector<8x4xf32>, vector<8x4xf32> -> vector<8x16xf32>
    %c0_101 = arith.constant 0 : index
    %c0_102 = arith.constant 0 : index
    %121 = vector.load %arg14[%c0_101, %c0_102] : memref<16x8xf32, #tpu.memory_space<vmem>>, vector<16x8xf32>
    %cst_103 = arith.constant dense<0.000000e+00> : vector<8x8xf32>
    %122 = tpu.matmul %120, %121, %cst_103 {dimension_numbers = #tpu.dot_dimension_numbers<[1], [0], [0], [1], [0, 0, 1, 1], [], []>} : vector<8x16xf32>, vector<16x8xf32>, vector<8x8xf32> -> vector<8x8xf32>
    %c0_104 = arith.constant 0 : index
    %c0_105 = arith.constant 0 : index
    %123 = vector.load %arg15[%c0_104, %c0_105] : memref<1x8xf32, #tpu.memory_space<vmem>>, vector<1x8xf32>
    %124 = vector.broadcast %123 : vector<1x8xf32> to vector<8x8xf32>
    %125 = arith.addf %122, %124 : vector<8x8xf32>
    %cst_106 = arith.constant 0.000000e+00 : f32
    %126 = vector.broadcast %cst_106 : f32 to vector<8x8xf32>
    %127 = arith.cmpf ogt, %125, %126 : vector<8x8xf32>
    %cst_107 = arith.constant 0.000000e+00 : f32
    %128 = vector.broadcast %cst_107 : f32 to vector<8x8xf32>
    %129 = arith.minimumf %125, %128 : vector<8x8xf32>
    %130 = math.exp %129 : vector<8x8xf32>
    %cst_108 = arith.constant 1.000000e+00 : f32
    %131 = vector.broadcast %cst_108 : f32 to vector<8x8xf32>
    %132 = arith.subf %130, %131 : vector<8x8xf32>
    %133 = arith.select %127, %125, %132 : vector<8x8xi1>, vector<8x8xf32>
    %c0_109 = arith.constant 0 : index
    %c0_110 = arith.constant 0 : index
    %c0_111 = arith.constant 0 : index
    %134 = vector.load %arg16[%c0_109, %c0_110, %c0_111] : memref<1x8x8xf32, #tpu.memory_space<vmem>>, vector<1x8x8xf32>
    %135 = vector.shape_cast %134 : vector<1x8x8xf32> to vector<8x8xf32>
    %136 = vector.shape_cast %133 : vector<8x8xf32> to vector<1x8x8xf32>
    tpu.vector_store %arg16[%c0_109, %c0_110, %c0_111], %136 {strides = array<i32>} : memref<1x8x8xf32, #tpu.memory_space<vmem>>, vector<1x8x8xf32>,
    return
  }
  func.func @transform_0(%arg0: i32) -> (i32, i32, i32) {
    %c0_i32 = arith.constant 0 : i32
    %c0_i32_0 = arith.constant 0 : i32
    %c0_i32_1 = arith.constant 0 : i32
    return %arg0, %c0_i32, %c0_i32_0 : i32, i32, i32
  }
  func.func @transform_1(%arg0: i32) -> (i32, i32) {
    %c0_i32 = arith.constant 0 : i32
    %c0_i32_0 = arith.constant 0 : i32
    %c0_i32_1 = arith.constant 0 : i32
    return %c0_i32, %c0_i32_0 : i32, i32
  }
  func.func @transform_2(%arg0: i32) -> (i32, i32) {
    %c0_i32 = arith.constant 0 : i32
    %c0_i32_0 = arith.constant 0 : i32
    %c0_i32_1 = arith.constant 0 : i32
    return %c0_i32, %c0_i32_0 : i32, i32
  }
  func.func @transform_3(%arg0: i32) -> (i32, i32) {
    %c0_i32 = arith.constant 0 : i32
    %c0_i32_0 = arith.constant 0 : i32
    %c0_i32_1 = arith.constant 0 : i32
    return %c0_i32, %c0_i32_0 : i32, i32
  }
  func.func @transform_4(%arg0: i32) -> (i32, i32) {
    %c0_i32 = arith.constant 0 : i32
    %c0_i32_0 = arith.constant 0 : i32
    %c0_i32_1 = arith.constant 0 : i32
    return %c0_i32, %c0_i32_0 : i32, i32
  }
  func.func @transform_5(%arg0: i32) -> (i32, i32) {
    %c0_i32 = arith.constant 0 : i32
    %c0_i32_0 = arith.constant 0 : i32
    %c0_i32_1 = arith.constant 0 : i32
    return %c0_i32, %c0_i32_0 : i32, i32
  }
  func.func @transform_6(%arg0: i32) -> (i32, i32) {
    %c0_i32 = arith.constant 0 : i32
    %c0_i32_0 = arith.constant 0 : i32
    %c0_i32_1 = arith.constant 0 : i32
    return %c0_i32, %c0_i32_0 : i32, i32
  }
  func.func @transform_7(%arg0: i32) -> (i32, i32) {
    %c0_i32 = arith.constant 0 : i32
    %c0_i32_0 = arith.constant 0 : i32
    %c0_i32_1 = arith.constant 0 : i32
    return %c0_i32, %c0_i32_0 : i32, i32
  }
  func.func @transform_8(%arg0: i32) -> (i32, i32) {
    %c0_i32 = arith.constant 0 : i32
    %c0_i32_0 = arith.constant 0 : i32
    %c0_i32_1 = arith.constant 0 : i32
    return %c0_i32, %c0_i32_0 : i32, i32
  }
  func.func @transform_9(%arg0: i32) -> (i32, i32) {
    %c0_i32 = arith.constant 0 : i32
    %c0_i32_0 = arith.constant 0 : i32
    %c0_i32_1 = arith.constant 0 : i32
    return %c0_i32, %c0_i32_0 : i32, i32
  }
  func.func @transform_10(%arg0: i32) -> (i32, i32) {
    %c0_i32 = arith.constant 0 : i32
    %c0_i32_0 = arith.constant 0 : i32
    %c0_i32_1 = arith.constant 0 : i32
    return %c0_i32, %c0_i32_0 : i32, i32
  }
  func.func @transform_11(%arg0: i32) -> (i32, i32) {
    %c0_i32 = arith.constant 0 : i32
    %c0_i32_0 = arith.constant 0 : i32
    %c0_i32_1 = arith.constant 0 : i32
    return %c0_i32, %c0_i32_0 : i32, i32
  }
  func.func @transform_12(%arg0: i32) -> (i32, i32) {
    %c0_i32 = arith.constant 0 : i32
    %c0_i32_0 = arith.constant 0 : i32
    %c0_i32_1 = arith.constant 0 : i32
    return %c0_i32, %c0_i32_0 : i32, i32
  }
  func.func @transform_13(%arg0: i32) -> (i32, i32) {
    %c0_i32 = arith.constant 0 : i32
    %c0_i32_0 = arith.constant 0 : i32
    %c0_i32_1 = arith.constant 0 : i32
    return %c0_i32, %c0_i32_0 : i32, i32
  }
  func.func @transform_14(%arg0: i32) -> (i32, i32) {
    %c0_i32 = arith.constant 0 : i32
    %c0_i32_0 = arith.constant 0 : i32
    %c0_i32_1 = arith.constant 0 : i32
    return %c0_i32, %c0_i32_0 : i32, i32
  }
  func.func @transform_15(%arg0: i32) -> (i32, i32, i32) {
    %c0_i32 = arith.constant 0 : i32
    %c0_i32_0 = arith.constant 0 : i32
    %c0_i32_1 = arith.constant 0 : i32
    return %arg0, %c0_i32, %c0_i32_0 : i32, i32, i32
  }
}

</mosaic_0001>

<bundles_post_ra>
// kernel: tpu_custom_call.1
= control target key start
LH: loop header
LB: loop body
LE: loop exit
PB: predicated region body
PF: predicated region fallthrough
CT: control target
= control target key end

     0   :  { %s2306_s0 = inlined_call_operand.vmem [shape: f32[2,16,4], index: 0, kind: input, shape index: {}]   ;;  %s2307_s1 = inlined_call_operand.vmem [shape: f32[28,4], index: 1, kind: input, shape index: {}]   ;;  %s2308_s2 = inlined_call_operand.vmem [shape: f32[1,4], index: 2, kind: input, shape index: {}]   ;;  %s2309_s3 = inlined_call_operand.vmem [shape: f32[4,4], index: 3, kind: input, shape index: {}]   ;;  %s2310_s4 = inlined_call_operand.vmem [shape: f32[1,4], index: 4, kind: input, shape index: {}]   ;;  %s2311_s5 = inlined_call_operand.vmem [shape: f32[28,4], index: 5, kind: input, shape index: {}]   ;;  %s2312_s6 = inlined_call_operand.vmem [shape: f32[1,4], index: 6, kind: input, shape index: {}]   ;;  %s2313_s7 = inlined_call_operand.vmem [shape: f32[4,4], index: 7, kind: input, shape index: {}]   ;;  %s2314_s8 = inlined_call_operand.vmem [shape: f32[1,4], index: 8, kind: input, shape index: {}]   ;;  %s2315_s9 = inlined_call_operand.vmem [shape: f32[28,4], index: 9, kind: input, shape index: {}]   ;;  %s2316_s10 = inlined_call_operand.vmem [shape: f32[1,4], index: 10, kind: input, shape index: {}]   ;;  %s2317_s11 = inlined_call_operand.vmem [shape: f32[4,4], index: 11, kind: input, shape index: {}]   ;;  %s2318_s12 = inlined_call_operand.vmem [shape: f32[1,4], index: 12, kind: input, shape index: {}]   ;;  %s2319_s13 = inlined_call_operand.vmem [shape: f32[16,8], index: 13, kind: input, shape index: {}]   ;;  %s2320_s14 = inlined_call_operand.vmem [shape: f32[1,8], index: 14, kind: input, shape index: {}]   ;;  %s2321_s15 = inlined_call_operand.hbm [shape: f32[2,8,8], index: 15, kind: output, shape index: {}]  }
   0x1   :  { %2336 = sst [smem:[#allocation9_spill]] %s2306_s0 }
   0x2   :  { %20 = vsyncpa [#allocation4], 0 }
   0x3   :  { %22 = vsyncpa [#allocation4 + $0x1], 0  ;;  %s1966_s18 = smov 0   ;;  %s1968_s19 = smov 0  }
   0x4   :  { %s1970_s20 = smov 0   ;;  %s1972_s21 = smov 0  }
   0x5 LB: > { %2337 = sst [smem:[#allocation6_spill]] %s1869_s20  ;;  %s1987_s22 = sadd.s32 4294967295, %s1873_s21   ;;  %s1873_s21 = sphi %s1972_s21, %s2351_s21   ;;  %s1869_s20 = sphi %s1970_s20, %s2353_s20   ;;  %s1865_s19 = sphi %s1968_s19, %s2355_s19   ;;  %s1861_s18 = sphi %s1966_s18, %s2354_s18  }
   0x6   : > { %s1567_s23 = sadd.s32 4294967294, %s1873_s21   ;;  %s1991_s24 = sadd.s32 1, %s1873_s21  }
   0x7   : > { %2338 = sst [smem:[#allocation7_spill]] %s1991_s24  ;;  %s355_s25 = sadd.s32 1, %s1869_s20 }
   0x8   : > { %s352_s26 = ssub.s32 %s1873_s21, %s1991_s24  ;;  %p365_p0 = scmp.ne.s32.totalorder %s1869_s20, %s1865_s19 }
   0x9   : > { %p353_p1 = scmp.eq.s32.totalorder %s352_s26, 0  ;;  %p366_p2 = scmp.eq.s32.totalorder %s1987_s22, 1 }
   0xa   : > { %p371_p3 = scmp.ne.s32.totalorder %s1865_s19, %s1861_s18  ;;  %p372_p4 = scmp.eq.s32.totalorder %s1567_s23, 1 }
   0xb   : > { %s2002_s27 = scalar_select %p353_p1, %s1869_s20, %s355_s25  }
   0xc   : > { %p2004_p5 = por %p366_p2, %p365_p0  ;;  %p2008_p6 = por %p372_p4, %p371_p3 }
   0xd   : > { %2339 = sst [smem:[#allocation8_spill]] %s2002_s27  ;;  %p1570_p7 = scmp.ge.s32.totalorder %s1873_s21, 1 }
   0xe   : > { %p440_p8 = scmp.lt.s32.totalorder %s1873_s21, 3 }
  0x10   : > { %p441_p9 = pnand %p1570_p7, %p440_p8 }
  0x11   : > { %p488_p10 = scmp.lt.s32.totalorder (!%p441_p9), %s1987_s22, 1  ;;  %vm493_vm0 = vcmask (!%p441_p9), 31744   ;;  %v1875_v0 = vmov (!%p441_p9), 0.0   ;;  %s2342_s0 = sld [smem:[#allocation9_spill]] (!%p441_p9)  ;;  %v587_v3 = vld [vmem:[%s2307_s1] sm:$0xff] (!%p441_p9)  ;;  %v588_v4 = vld [vmem:[%s2307_s1 + $0x8] sm:$0xff] (!%p441_p9) }
  0x12   : > { %444 = sbr.rel (%p441_p9) target bundleno = 2234 (0x8ba), region = 80  ;;  %497 = vst.msk [vmem:[#allocation2 + $0x18] sm:$0xff] (!%p441_p9), %vm493_vm0, %v1875_v0  ;;  %498 = vst.msk [vmem:[#allocation2 + $0x20] sm:$0xff] (!%p441_p9), %vm493_vm0, %v1875_v0  ;;  %v1703_v7 = vpack.c.bf16 (!%p441_p9), %v588_v4, %v587_v3  ;;  %v589_v10 = vld [vmem:[%s2307_s1 + $0x10] sm:$0xff] (!%p441_p9)  ;;  %vm605_vm1 = vcmask (!%p441_p9), 1043456   ;;  %vm1878_vm2 = vmmov (!%p441_p9), 1  }
  0x13   : > { %499 = vst.msk [vmem:[#allocation2 + $0x28] sm:$0xff] (!%p441_p9), %vm493_vm0, %v1875_v0  ;;  %494 = vst.msk [vmem:[#allocation2] sm:$0xff] (!%p441_p9), %vm493_vm0, %v1875_v0  ;;  %v590_v11 = vld [vmem:[%s2307_s1 + $0x18] sm:$0xf] (!%p441_p9)  ;;  %s2331_s23 = smov (!%p441_p9), 12   ;;  %s2327_s26 = smov (!%p441_p9), 20  }
  0x14   : > { %495 = vst.msk [vmem:[#allocation2 + $0x8] sm:$0xff] (!%p441_p9), %vm493_vm0, %v1875_v0  ;;  %496 = vst.msk [vmem:[#allocation2 + $0x10] sm:$0xff] (!%p441_p9), %vm493_vm0, %v1875_v0  ;;  %1704 = vmatprep.subr.bf16.mxu0 (!%p441_p9), %v1703_v7  ;;  %v1707_v15 = vpack.c.bf16 (!%p441_p9), %v590_v11, %v589_v10  ;;  %s2325_s17 = smov (!%p441_p9), 24   ;;  %vm572_vm4 = vcmask (!%p441_p9), 64512   ;;  %vm575_vm5 = vcmask (!%p441_p9), 97280   ;;  %vm578_vm6 = vcmask (!%p441_p9), 130048  }
  0x15   : > { %500 = vst.msk [vmem:[#allocation2 + $0x30] sm:$0xff] (!%p441_p9), %vm493_vm0, %v1875_v0  ;;  %501 = vst.msk [vmem:[#allocation2 + $0x38] sm:$0xff] (!%p441_p9), %vm493_vm0, %v1875_v0  ;;  %1706 = vmatpush3.bf16.msra.mxu0 (!%p441_p9), %v1703_v7  ;;  %vm581_vm7 = vcmask (!%p441_p9), 162816   ;;  %vm584_vm8 = vcmask (!%p441_p9), 195584   ;;  %vm598_vm9 = vcmask (!%p441_p9), 228352   ;;  %s2346_s20 = smov (!%p441_p9), 20  }
  0x16   : > { %502 = vst.msk [vmem:[#allocation2 + $0x40] sm:$0xff] (!%p441_p9), %vm493_vm0, %v1875_v0  ;;  %503 = vst.msk [vmem:[#allocation2 + $0x48] sm:$0xff] (!%p441_p9), %vm493_vm0, %v1875_v0  ;;  %v696_v48 = vld [vmem:[%s2309_s3] sm:$0xf] (!%p441_p9)  ;;  %s2347_s24 = smov (!%p441_p9), 12   ;;  %s2350_s27 = smov (!%p441_p9), 16  }
  0x17   : > { %vm2058_vm3 = vmpackc.low (!%p441_p9), %vm605_vm1, %vm1878_vm2  ;;  %1659 = vmatprep.subr.msk.mxu1 (!%p441_p9), %vm605_vm1, %v696_v48  ;;  %v1574_v49 = vld [vmem:[%s2308_s2] ss:$0 sm:$0xff] (!%p441_p9) }
  0x18   : > { %1709 = vmatprep.subr.msk.bf16.mxu0 (!%p441_p9), %vm2058_vm3, %v1707_v15  ;;  %1660 = vmatpush3.msk.msra.mxu1 (!%p441_p9), %vm605_vm1, %v696_v48 }
  0x19   : > { %s489_s30 = scalar_select %p488_p10, %s1987_s22, 1  ;;  %1712 = vmatpush3.bf16.msk.msra.mxu0 %vm2058_vm3, %v1707_v15 }
  0x1b   : > { %s1617_s16 = sshll.u32 %s489_s30, 4  ;;  %s2329_s30 = smov 8  }
  0x1c   : > { %s492_s25 = scalar_lea.vmem %s2342_s0, %s1617_s16  ;;  %s2333_s16 = smov 4  }
  0x1d   : > { %v504_v1 = vld [vmem:[%s492_s25] sm:$0xff]  ;;  %v505_v2 = vld [vmem:[%s492_s25 + $0x8] sm:$0xff]  ;;  %s2335_s25 = smov 16   ;;  %s2348_s0 = smov 4  }
  0x1e   : > { %506 = vst.msk [vmem:[#allocation2 + $0x20] sm:$0xff] %vm493_vm0, %v504_v1  ;;  %507 = vst.msk [vmem:[#allocation2 + $0x28] sm:$0xff] %vm493_vm0, %v505_v2  ;;  %v1580_v1 = vld [vmem:[%s2310_s4] ss:$0 sm:$0xff] }
  0x25   : > { %v512_v5 = vld [vmem:[#allocation2 + $0x1f] sm:$0xff]  ;;  %v513_v8 = vld [vmem:[#allocation2 + $0x27] sm:$0xff] }
  0x26   : > { %v510_v6 = vld [vmem:[#allocation2 + $0x1e] sm:$0xff]  ;;  %532 = vrot.lane.b32.xlu1 %v512_v5, %s2329_s30  ;;  %v511_v9 = vld [vmem:[#allocation2 + $0x26] sm:$0xff] }
  0x27   : > { %524 = vrot.lane.b32.xlu0 %v510_v6, %s2333_s16  ;;  %v2062_v13 = vld [vmem:[#allocation2 + $0x28] sm:$0xff]  ;;  %v2064_v14 = vld [vmem:[#allocation2 + $0x20] sm:$0xff] }
  0x28   : > { %v517_v16 = vld [vmem:[#allocation2 + $0x29] sm:$0xff]  ;;  %v516_v17 = vld [vmem:[#allocation2 + $0x21] sm:$0xff] }
  0x29   : > { %v519_v18 = vld [vmem:[#allocation2 + $0x2a] sm:$0xff]  ;;  %v518_v19 = vld [vmem:[#allocation2 + $0x22] sm:$0xff] }
  0x2a   : > { %534 = vrot.lane.b32.xlu1 %v513_v8, %s2329_s30  ;;  %v521_v20 = vld [vmem:[#allocation2 + $0x2b] sm:$0xff]  ;;  %v520_v21 = vld [vmem:[#allocation2 + $0x23] sm:$0xff]  ;;  %s2349_s30 = smov 24  }
  0x2b   : > { %526 = vrot.lane.b32.xlu0 %v511_v9, %s2333_s16  ;;  %v508_v28 = vld [vmem:[#allocation2 + $0x1d] sm:$0xff]  ;;  %v509_v29 = vld [vmem:[#allocation2 + $0x25] sm:$0xff] }
  0x2e   : > { %542 = vrot.lane.b32.xlu1 %v2062_v13, %s2331_s23 }
  0x2f   : > { %540 = vrot.lane.b32.xlu0 %v2064_v14, %s2331_s23 }
  0x32   : > { %550 = vrot.lane.b32.xlu1 %v517_v16, %s2335_s25 }
  0x33   : > { %548 = vrot.lane.b32.xlu0 %v516_v17, %s2335_s25 }
  0x36   : > { %558 = vrot.lane.b32.xlu1 %v519_v18, %s2327_s26 }
  0x37   : > { %556 = vrot.lane.b32.xlu0 %v518_v19, %s2327_s26  ;;  %s1885_s26 = smov [#allocation3]  }
  0x3a   : > { %566 = vrot.lane.b32.xlu1 %v521_v20, %s2325_s17 }
  0x3b   : > { %564 = vrot.lane.b32.xlu0 %v520_v21, %s2325_s17 }
  0x98   : > { %v533_v22 = vpop.permute.xlu1 %532 }
  0x99   : > { %v525_v23 = vpop.permute.xlu0 %524 }
  0x9a   : > { %v570_v32 = vsel %vm493_vm0, %v508_v28, %v525_v23 }
  0x9b   : > { %v573_v37 = vsel %vm572_vm4, %v570_v32, %v533_v22 }
  0x9c   : > { %v535_v24 = vpop.permute.xlu1 %534 }
  0x9d   : > { %v527_v25 = vpop.permute.xlu0 %526 }
  0x9e   : > { %v571_v33 = vsel %vm493_vm0, %v509_v29, %v527_v25 }
  0x9f   : > { %v574_v36 = vsel %vm572_vm4, %v571_v33, %v535_v24 }
  0xa0   : > { %v543_v26 = vpop.permute.xlu1 %542 }
  0xa1   : > { %v541_v27 = vpop.permute.xlu0 %540  ;;  %v577_v38 = vsel %vm575_vm5, %v574_v36, %v543_v26  ;;  %v880_v26 = vld [vmem:[%s2311_s5 + $0x10] sm:$0xff] }
  0xa2   : > { %v576_v39 = vsel %vm575_vm5, %v573_v37, %v541_v27  ;;  %v881_v27 = vld [vmem:[%s2311_s5 + $0x18] sm:$0xf] }
  0xa3   : > { %v1717_v28 = vpack.c.bf16 %v881_v27, %v880_v26 }
  0xa4   : > { %v551_v30 = vpop.permute.xlu1 %550 }
  0xa5   : > { %v549_v31 = vpop.permute.xlu0 %548  ;;  %v580_v40 = vsel %vm578_vm6, %v577_v38, %v551_v30 }
  0xa6   : > { %v579_v41 = vsel %vm578_vm6, %v576_v39, %v549_v31 }
  0xa8   : > { %v559_v34 = vpop.permute.xlu1 %558 }
  0xa9   : > { %v557_v35 = vpop.permute.xlu0 %556  ;;  %v583_v42 = vsel %vm581_vm7, %v580_v40, %v559_v34 }
  0xaa   : > { %v582_v43 = vsel %vm581_vm7, %v579_v41, %v557_v35  ;;  %v817_v35 = vld [vmem:[#allocation2 + $0x31] sm:$0xff] }
  0xac   : > { %v567_v44 = vpop.permute.xlu1 %566 }
  0xad   : > { %v565_v45 = vpop.permute.xlu0 %564  ;;  %v586_v46 = vsel %vm584_vm8, %v583_v42, %v567_v44 }
  0xae   : > { %v585_v47 = vsel %vm584_vm8, %v582_v43, %v565_v45  ;;  %v804_v45 = vld [vmem:[#allocation2 + $0x17] sm:$0xff] }
  0xaf   : > { %1656 = vmatprep.mubr.msk.f32.mxu0 %vm598_vm9, %v585_v47 }
  0xb0   : > { %1657 = vmatmul.mubr.msk.f32.vlgmr.msra.gmra.mrb[0].mxu0 %vm598_vm9, %v586_v46 }
 0x183   : > { %v1658_v50 = vpop.f32.mrb[0].mxu0 }
 0x184   : > { %v681_v51 = vadd.f32 %v1658_v50, %v1574_v49  ;;  %v675_v52 = vpop.f32.mrb[1].mxu0 }
 0x185   : > { %v676_v53 = vadd.f32 %v1574_v49, %v675_v52 }
 0x186   : > { %v687_v54 = vmin.f32 %v681_v51, 0.0  ;;  %vm685_vm11 = vcmp.gt.f32.partialorder %v681_v51, 0.0 }
 0x187   : > { %v686_v55 = vmin.f32 %v676_v53, 0.0  ;;  %vm684_vm10 = vcmp.gt.f32.partialorder %v676_v53, 0.0 }
 0x188   : > { %v690_v56 = vmul.f32 1.442695, %v687_v54 }
 0x189   : > { %v688_v57 = vmul.f32 1.442695, %v686_v55 }
 0x18a   : > { %1785 = vpow2.f32 %v690_v56 }
 0x18b   : > { %1787 = vpow2.f32 %v688_v57 }
 0x194   : > { %v1786_v58 = vpop.eup %1785 }
 0x195   : > { %v1788_v59 = vpop.eup %1787  ;;  %v1579_v60 = vadd.f32 -1.0, %v1786_v58 }
 0x196   : > { %v1578_v61 = vadd.f32 -1.0, %v1788_v59 }
 0x197   : > { %v695_v63 = vsel %vm685_vm11, %v681_v51, %v1579_v60 }
 0x198   : > { %v694_v62 = vsel %vm684_vm10, %v676_v53, %v1578_v61 }
 0x199   : > { %1661 = vmatprep.mubr.msk.f32.mxu1 %vm493_vm0, %v694_v62 }
 0x19a   : > { %1662 = vmatmul.mubr.msk.f32.vlgmr.msra.gmra.mrb[0].mxu1 %vm493_vm0, %v695_v63  ;;  %v985_v63 = vld [vmem:[%s2313_s7] sm:$0xf] }
 0x19b   : > { %1675 = vmatprep.subr.msk.mxu0 %vm605_vm1, %v985_v63 }
 0x19c   : > { %1676 = vmatpush3.msk.msra.mxu0 %vm605_vm1, %v985_v63 }
 0x26d   : > { %v1663_v2 = vpop.f32.mrb[0].mxu1 }
 0x26e   : > { %v785_v3 = vadd.f32 %v1663_v2, %v1580_v1  ;;  %v779_v4 = vpop.f32.mrb[1].mxu1 }
 0x26f   : > { %v780_v5 = vadd.f32 %v1580_v1, %v779_v4  ;;  %v1586_v1 = vld [vmem:[%s2312_s6] ss:$0 sm:$0xff] }
 0x270   : > { %v791_v6 = vmin.f32 %v785_v3, 0.0  ;;  %vm789_vm12 = vcmp.gt.f32.partialorder %v785_v3, 0.0 }
 0x271   : > { %v790_v7 = vmin.f32 %v780_v5, 0.0  ;;  %vm788_vm13 = vcmp.gt.f32.partialorder %v780_v5, 0.0 }
 0x272   : > { %v794_v8 = vmul.f32 1.442695, %v791_v6 }
 0x273   : > { %v792_v9 = vmul.f32 1.442695, %v790_v7 }
 0x274   : > { %1789 = vpow2.f32 %v794_v8 }
 0x275   : > { %1791 = vpow2.f32 %v792_v9 }
 0x27e   : > { %v1790_v10 = vpop.eup %1789 }
 0x27f   : > { %v1792_v11 = vpop.eup %1791  ;;  %v1585_v15 = vadd.f32 -1.0, %v1790_v10 }
 0x280   : > { %v1584_v16 = vadd.f32 -1.0, %v1792_v11 }
 0x281   : > { %v799_v17 = vsel %vm789_vm12, %v785_v3, %v1585_v15 }
 0x282   : > { %v801_v18 = vadd.f32 %v799_v17, %v2062_v13  ;;  %v798_v19 = vsel %vm788_vm13, %v780_v5, %v1584_v16  ;;  %v878_v13 = vld [vmem:[%s2311_s5] sm:$0xff] }
 0x283   : > { %v800_v20 = vadd.f32 %v798_v19, %v2064_v14  ;;  %v879_v14 = vld [vmem:[%s2311_s5 + $0x8] sm:$0xff] }
 0x284   : > { %803 = vst.msk [vmem:[#allocation2 + $0x28] sm:$0xff] %vm493_vm0, %v801_v18  ;;  %v1713_v25 = vpack.c.bf16 %v879_v14, %v878_v13  ;;  %v1095_v19 = vld [vmem:[#allocation2 + $0xe] sm:$0xff]  ;;  %v1592_v13 = vld [vmem:[%s2314_s8] ss:$0 sm:$0xff] }
 0x285   : > { %802 = vst.msk [vmem:[#allocation2 + $0x20] sm:$0xff] %vm493_vm0, %v800_v20  ;;  %v1096_v20 = vld [vmem:[#allocation2 + $0x16] sm:$0xff] }
 0x286   : > { %1714 = vmatprep.subr.bf16.mxu1 %v1713_v25 }
 0x287   : > { %1716 = vmatpush3.bf16.msra.mxu1 %v1713_v25 }
 0x288   : > { %1719 = vmatprep.subr.msk.bf16.mxu1 %vm2058_vm3, %v1717_v28 }
 0x28b   : > { %v2111_v21 = vld [vmem:[#allocation2 + $0x28] sm:$0xff]  ;;  %1722 = vmatpush3.bf16.msk.msra.mxu1 %vm2058_vm3, %v1717_v28 }
 0x28c   : > { %838 = vrot.lane.b32.xlu1 %v2111_v21, %s2331_s23  ;;  %v806_v22 = vld [vmem:[#allocation2 + $0x1a] sm:$0xff]  ;;  %v813_v23 = vld [vmem:[#allocation2 + $0x2b] sm:$0xff]  ;;  %v807_v31 = vld [vmem:[#allocation2 + $0x22] sm:$0xff] }
 0x28d   : > { %820 = vrot.lane.b32.xlu0 %v806_v22, %s2333_s16  ;;  %v808_v24 = vld [vmem:[#allocation2 + $0x1d] sm:$0xff]  ;;  %s2345_s16 = smov 8   ;;  %v815_v29 = vld [vmem:[#allocation2 + $0x2e] sm:$0xff]  ;;  %v809_v33 = vld [vmem:[#allocation2 + $0x25] sm:$0xff] }
 0x28e   : > { %v2131_v30 = vld [vmem:[#allocation2 + $0x20] sm:$0xff]  ;;  %v816_v36 = vld [vmem:[#allocation2 + $0x29] sm:$0xff]  ;;  %v1103_v22 = vld [vmem:[#allocation2 + $0x32] sm:$0xff] }
 0x28f   : > { %v812_v32 = vld [vmem:[#allocation2 + $0x23] sm:$0xff] }
 0x290   : > { %846 = vrot.lane.b32.xlu1 %v813_v23, %s2335_s25  ;;  %v814_v34 = vld [vmem:[#allocation2 + $0x26] sm:$0xff]  ;;  %v1104_v23 = vld [vmem:[#allocation2 + $0x3a] sm:$0xff] }
 0x291   : > { %828 = vrot.lane.b32.xlu0 %v808_v24, %s2345_s16  ;;  %v805_v46 = vld [vmem:[#allocation2 + $0x1f] sm:$0xff] }
 0x294   : > { %854 = vrot.lane.b32.xlu1 %v815_v29, %s2346_s20 }
 0x295   : > { %836 = vrot.lane.b32.xlu0 %v2131_v30, %s2347_s24 }
 0x298   : > { %822 = vrot.lane.b32.xlu1 %v807_v31, %s2348_s0 }
 0x299   : > { %844 = vrot.lane.b32.xlu0 %v812_v32, %s2335_s25 }
 0x29c   : > { %830 = vrot.lane.b32.xlu1 %v809_v33, %s2345_s16  ;;  %v1167_v33 = vld [vmem:[%s2315_s9] sm:$0xff] }
 0x29d   : > { %852 = vrot.lane.b32.xlu0 %v814_v34, %s2346_s20  ;;  %v1168_v34 = vld [vmem:[%s2315_s9 + $0x8] sm:$0xff] }
 0x2a0   : > { %862 = vrot.lane.b32.xlu1 %v817_v35, %s2349_s30 }
 0x2a1   : > { %860 = vrot.lane.b32.xlu0 %v816_v36, %s2349_s30 }
 0x2a4   : > { %1111 = vrot.lane.b32.xlu1 %v1096_v20, %s2348_s0 }
 0x2a5   : > { %1109 = vrot.lane.b32.xlu0 %v1095_v19, %s2348_s0 }
 0x2a8   : > { %1135 = vrot.lane.b32.xlu1 %v817_v35, %s2335_s25  ;;  %s1614_s25 = sshll.u32 %s1987_s22, 7 }
 0x2a9   : > { %1117 = vrot.lane.b32.xlu0 %v804_v45, %s2345_s16  ;;  %s2263_s23 = scalar_lea.hbm %s2321_s15, %s1614_s25 }
 0x2ac   : > { %1143 = vrot.lane.b32.xlu1 %v1104_v23, %s2346_s20 }
 0x2ad   : > { %1141 = vrot.lane.b32.xlu0 %v1103_v22, %s2346_s20 }
 0x2fe   : > { %v839_v37 = vpop.permute.xlu1 %838 }
 0x2ff   : > { %v821_v38 = vpop.permute.xlu0 %820 }
 0x300   : > { %v866_v49 = vsel %vm493_vm0, %v804_v45, %v821_v38 }
 0x302   : > { %v847_v39 = vpop.permute.xlu1 %846 }
 0x303   : > { %v829_v40 = vpop.permute.xlu0 %828 }
 0x304   : > { %v868_v52 = vsel %vm572_vm4, %v866_v49, %v829_v40  ;;  %v1106_v49 = vld [vmem:[#allocation2 + $0x43] sm:$0xff] }
 0x306   : > { %v855_v41 = vpop.permute.xlu1 %854 }
 0x307   : > { %v837_v42 = vpop.permute.xlu0 %836 }
 0x308   : > { %v870_v54 = vsel %vm575_vm5, %v868_v52, %v837_v42 }
 0x30a   : > { %v823_v43 = vpop.permute.xlu1 %822 }
 0x30b   : > { %v845_v44 = vpop.permute.xlu0 %844  ;;  %v867_v47 = vsel %vm493_vm0, %v805_v46, %v823_v43  ;;  %v1169_v43 = vld [vmem:[%s2315_s9 + $0x10] sm:$0xff] }
 0x30c   : > { %v872_v56 = vsel %vm578_vm6, %v870_v54, %v845_v44  ;;  %v1170_v44 = vld [vmem:[%s2315_s9 + $0x18] sm:$0xf] }
 0x30d   : > { %v1727_v45 = vpack.c.bf16 %v1170_v44, %v1169_v43  ;;  %v1405_v44 = vld [vmem:[%s2319_s13] sm:$0xff] }
 0x30e   : > { %v831_v48 = vpop.permute.xlu1 %830 }
 0x30f   : > { %v869_v50 = vsel %vm572_vm4, %v867_v47, %v831_v48  ;;  %v853_v51 = vpop.permute.xlu0 %852  ;;  %v1105_v48 = vld [vmem:[#allocation2 + $0x3b] sm:$0xff] }
 0x310   : > { %v871_v53 = vsel %vm575_vm5, %v869_v50, %v839_v37  ;;  %v874_v59 = vsel %vm581_vm7, %v872_v56, %v853_v51  ;;  %v1723_v37 = vpack.c.bf16 %v1168_v34, %v1167_v33 }
 0x311   : > { %v873_v55 = vsel %vm578_vm6, %v871_v53, %v847_v39 }
 0x312   : > { %v863_v57 = vpop.permute.xlu1 %862  ;;  %v875_v58 = vsel %vm581_vm7, %v873_v55, %v855_v41  ;;  %1724 = vmatprep.subr.bf16.mxu1 %v1723_v37  ;;  %v1093_v55 = vld [vmem:[#allocation2 + $0x5] sm:$0xff] }
 0x313   : > { %v861_v60 = vpop.permute.xlu0 %860  ;;  %v877_v62 = vsel %vm584_vm8, %v875_v58, %v863_v57 }
 0x314   : > { %v876_v61 = vsel %vm584_vm8, %v874_v59, %v861_v60  ;;  %v1094_v59 = vld [vmem:[#allocation2 + $0xd] sm:$0xff] }
 0x315   : > { %1672 = vmatprep.mubr.msk.f32.mxu1 %vm598_vm9, %v876_v61 }
 0x316   : > { %1673 = vmatmul.mubr.msk.f32.vlgmr.msra.gmra.mrb[2].mxu1 %vm598_vm9, %v877_v62  ;;  %v1112_v12 = vpop.permute.xlu1 %1111 }
 0x317   : > { %1726 = vmatpush3.bf16.msra.mxu1 %v1723_v37  ;;  %v1110_v50 = vpop.permute.xlu0 %1109  ;;  %v1156_v60 = vsel %vm493_vm0, %v1094_v59, %v1112_v12 }
 0x318   : > { %1729 = vmatprep.subr.msk.bf16.mxu1 %vm2058_vm3, %v1727_v45  ;;  %v1155_v58 = vsel %vm493_vm0, %v1093_v55, %v1110_v50 }
 0x31a   : > { %v1136_v51 = vpop.permute.xlu1 %1135 }
 0x31b   : > { %1732 = vmatpush3.bf16.msk.msra.mxu1 %vm2058_vm3, %v1727_v45  ;;  %v1118_v52 = vpop.permute.xlu0 %1117  ;;  %v1406_v45 = vld [vmem:[%s2319_s13 + $0x8] sm:$0xff] }
 0x31c   : > { %v1157_v61 = vsel %vm572_vm4, %v1155_v58, %v1118_v52  ;;  %v1610_v58 = vld [vmem:[%s2320_s14] ss:$0 sm:$0xff] }
 0x31e   : > { %v1144_v53 = vpop.permute.xlu1 %1143 }
 0x31f   : > { %v1142_v54 = vpop.permute.xlu0 %1141 }
 0x3e9   : > { %v1674_v2 = vpop.f32.mrb[2].mxu1 }
 0x3ea   : > { %v970_v3 = vadd.f32 %v1674_v2, %v1586_v1  ;;  %v964_v4 = vpop.f32.mrb[3].mxu1 }
 0x3eb   : > { %v965_v5 = vadd.f32 %v1586_v1, %v964_v4 }
 0x3ec   : > { %v976_v6 = vmin.f32 %v970_v3, 0.0  ;;  %vm974_vm15 = vcmp.gt.f32.partialorder %v970_v3, 0.0 }
 0x3ed   : > { %v975_v7 = vmin.f32 %v965_v5, 0.0  ;;  %vm973_vm14 = vcmp.gt.f32.partialorder %v965_v5, 0.0 }
 0x3ee   : > { %v979_v8 = vmul.f32 1.442695, %v976_v6 }
 0x3ef   : > { %v977_v9 = vmul.f32 1.442695, %v975_v7 }
 0x3f0   : > { %1793 = vpow2.f32 %v979_v8 }
 0x3f1   : > { %1795 = vpow2.f32 %v977_v9 }
 0x3fa   : > { %v1794_v10 = vpop.eup %1793 }
 0x3fb   : > { %v1796_v11 = vpop.eup %1795  ;;  %v1591_v15 = vadd.f32 -1.0, %v1794_v10 }
 0x3fc   : > { %v1590_v16 = vadd.f32 -1.0, %v1796_v11 }
 0x3fd   : > { %v984_v18 = vsel %vm974_vm15, %v970_v3, %v1591_v15  ;;  %v1274_v15 = vld [vmem:[%s2317_s11] sm:$0xf] }
 0x3fe   : > { %v983_v17 = vsel %vm973_vm14, %v965_v5, %v1590_v16  ;;  %1691 = vmatprep.subr.msk.mxu0 %vm605_vm1, %v1274_v15  ;;  %v1598_v16 = vld [vmem:[%s2316_s10] ss:$0 sm:$0xff] }
 0x3ff   : > { %1677 = vmatprep.mubr.msk.f32.mxu0 %vm493_vm0, %v983_v17 }
 0x400   : > { %1678 = vmatmul.mubr.msk.f32.vlgmr.msra.gmra.mrb[2].mxu0 %vm493_vm0, %v984_v18 }
 0x401   : > { %1692 = vmatpush3.msk.msra.mxu0 %vm605_vm1, %v1274_v15 }
 0x4d3   : > { %v1679_v14 = vpop.f32.mrb[2].mxu0 }
 0x4d4   : > { %v1074_v24 = vadd.f32 %v1679_v14, %v1592_v13  ;;  %v1068_v25 = vpop.f32.mrb[3].mxu0 }
 0x4d5   : > { %v1069_v26 = vadd.f32 %v1592_v13, %v1068_v25 }
 0x4d6   : > { %v1080_v27 = vmin.f32 %v1074_v24, 0.0  ;;  %vm1078_vm2 = vcmp.gt.f32.partialorder %v1074_v24, 0.0 }
 0x4d7   : > { %v1079_v28 = vmin.f32 %v1069_v26, 0.0  ;;  %vm1077_vm10 = vcmp.gt.f32.partialorder %v1069_v26, 0.0 }
 0x4d8   : > { %v1083_v29 = vmul.f32 1.442695, %v1080_v27 }
 0x4d9   : > { %v1081_v31 = vmul.f32 1.442695, %v1079_v28 }
 0x4da   : > { %1797 = vpow2.f32 %v1083_v29 }
 0x4db   : > { %1799 = vpow2.f32 %v1081_v31  ;;  %v1604_v31 = vld [vmem:[%s2318_s12] ss:$0 sm:$0xff] }
 0x4e4   : > { %v1798_v32 = vpop.eup %1797 }
 0x4e5   : > { %v1800_v35 = vpop.eup %1799  ;;  %v1597_v36 = vadd.f32 -1.0, %v1798_v32 }
 0x4e6   : > { %v1596_v38 = vadd.f32 -1.0, %v1800_v35 }
 0x4e7   : > { %v1088_v39 = vsel %vm1078_vm2, %v1074_v24, %v1597_v36 }
 0x4e8   : > { %v1090_v40 = vadd.f32 %v1088_v39, %v2111_v21  ;;  %v1087_v41 = vsel %vm1077_vm10, %v1069_v26, %v1596_v38 }
 0x4e9   : > { %v1089_v42 = vadd.f32 %v1087_v41, %v2131_v30 }
 0x4ea   : > { %1092 = vst.msk [vmem:[#allocation2 + $0x28] sm:$0xff] %vm493_vm0, %v1090_v40 }
 0x4eb   : > { %1091 = vst.msk [vmem:[#allocation2 + $0x20] sm:$0xff] %vm493_vm0, %v1089_v42 }
 0x4f1   : > { %v1101_v21 = vld [vmem:[#allocation2 + $0x29] sm:$0xff] }
 0x4f2   : > { %v2198_v30 = vld [vmem:[#allocation2 + $0x28] sm:$0xff]  ;;  %1133 = vrot.lane.b32.xlu0 %v1101_v21, %s2350_s27  ;;  %v2203_v46 = vld [vmem:[#allocation2 + $0x20] sm:$0xff] }
 0x4f3   : > { %1127 = vrot.lane.b32.xlu1 %v2198_v30, %s2347_s24  ;;  %v1098_v47 = vld [vmem:[#allocation2 + $0x1f] sm:$0xff] }
 0x4f6   : > { %1125 = vrot.lane.b32.xlu0 %v2203_v46, %s2347_s24 }
 0x4f7   : > { %1119 = vrot.lane.b32.xlu1 %v1098_v47, %s2345_s16  ;;  %v1883_v47 = vmov 0.0|0.0  }
 0x4f8   : > { %1733 = vmatprep.subr.bf16.mxu0 %v1883_v47 }
 0x4fa   : > { %1149 = vrot.lane.b32.xlu0 %v1105_v48, %s2349_s30  ;;  %v1734_v48 = vpack.c.bf16 %v1406_v45, %v1405_v44 }
 0x4fb   : > { %1151 = vrot.lane.b32.xlu1 %v1106_v49, %s2349_s30 }
 0x564   : > { %v1134_v56 = vpop.permute.xlu0 %1133 }
 0x565   : > { %v1128_v57 = vpop.permute.xlu1 %1127 }
 0x568   : > { %v1126_v62 = vpop.permute.xlu0 %1125 }
 0x569   : > { %v1120_v63 = vpop.permute.xlu1 %1119  ;;  %v1159_v1 = vsel %vm575_vm5, %v1157_v61, %v1126_v62 }
 0x56a   : > { %v1158_v2 = vsel %vm572_vm4, %v1156_v60, %v1120_v63  ;;  %v1161_v3 = vsel %vm578_vm6, %v1159_v1, %v1134_v56 }
 0x56b   : > { %v1160_v4 = vsel %vm575_vm5, %v1158_v2, %v1128_v57  ;;  %v1163_v5 = vsel %vm581_vm7, %v1161_v3, %v1142_v54 }
 0x56c   : > { %v1162_v6 = vsel %vm578_vm6, %v1160_v4, %v1136_v51  ;;  %v1150_v7 = vpop.permute.xlu0 %1149 }
 0x56d   : > { %v1164_v8 = vsel %vm581_vm7, %v1162_v6, %v1144_v53  ;;  %v1152_v9 = vpop.permute.xlu1 %1151  ;;  %v1165_v10 = vsel %vm584_vm8, %v1163_v5, %v1150_v7 }
 0x56e   : > { %v1166_v11 = vsel %vm584_vm8, %v1164_v8, %v1152_v9  ;;  %1688 = vmatprep.mubr.msk.f32.mxu1 %vm598_vm9, %v1165_v10 }
 0x56f   : > { %1689 = vmatmul.mubr.msk.f32.vlgmr.msra.gmra.mrb[4].mxu1 %vm598_vm9, %v1166_v11  ;;  %vm1884_vm9 = vmmov 0  }
 0x642   : > { %v1690_v17 = vpop.f32.mrb[4].mxu1 }
 0x643   : > { %v1259_v18 = vadd.f32 %v1690_v17, %v1598_v16  ;;  %v1253_v19 = vpop.f32.mrb[5].mxu1 }
 0x644   : > { %v1254_v20 = vadd.f32 %v1598_v16, %v1253_v19 }
 0x645   : > { %v1265_v22 = vmin.f32 %v1259_v18, 0.0  ;;  %vm1263_vm1 = vcmp.gt.f32.partialorder %v1259_v18, 0.0 }
 0x646   : > { %v1264_v23 = vmin.f32 %v1254_v20, 0.0  ;;  %vm1262_vm3 = vcmp.gt.f32.partialorder %v1254_v20, 0.0 }
 0x647   : > { %v1268_v13 = vmul.f32 1.442695, %v1265_v22 }
 0x648   : > { %v1266_v14 = vmul.f32 1.442695, %v1264_v23 }
 0x649   : > { %1801 = vpow2.f32 %v1268_v13 }
 0x64a   : > { %1803 = vpow2.f32 %v1266_v14 }
 0x653   : > { %v1802_v24 = vpop.eup %1801 }
 0x654   : > { %v1804_v25 = vpop.eup %1803  ;;  %v1603_v26 = vadd.f32 -1.0, %v1802_v24 }
 0x655   : > { %v1602_v27 = vadd.f32 -1.0, %v1804_v25 }
 0x656   : > { %v1273_v29 = vsel %vm1263_vm1, %v1259_v18, %v1603_v26 }
 0x657   : > { %v1272_v28 = vsel %vm1262_vm3, %v1254_v20, %v1602_v27 }
 0x658   : > { %1693 = vmatprep.mubr.msk.f32.mxu0 %vm493_vm0, %v1272_v28 }
 0x659   : > { %1694 = vmatmul.mubr.msk.f32.vlgmr.msra.gmra.mrb[4].mxu0 %vm493_vm0, %v1273_v29 }
 0x65a   : > { %1735 = vmatpush3.bf16.msra.mxu0 %v1734_v48  ;;  %1700 = vmatprep.mubr.msk.f32.mxu0 %vm1884_vm9, %v1875_v0 }
 0x72c   : > { %v1695_v32 = vpop.f32.mrb[4].mxu0 }
 0x72d   : > { %v1363_v33 = vadd.f32 %v1695_v32, %v1604_v31  ;;  %v1357_v34 = vpop.f32.mrb[5].mxu0 }
 0x72e   : > { %v1358_v35 = vadd.f32 %v1604_v31, %v1357_v34 }
 0x72f   : > { %v1369_v36 = vmin.f32 %v1363_v33, 0.0  ;;  %vm1367_vm7 = vcmp.gt.f32.partialorder %v1363_v33, 0.0 }
 0x730   : > { %v1368_v37 = vmin.f32 %v1358_v35, 0.0  ;;  %vm1366_vm8 = vcmp.gt.f32.partialorder %v1358_v35, 0.0 }
 0x731   : > { %v1372_v38 = vmul.f32 1.442695, %v1369_v36 }
 0x732   : > { %v1370_v39 = vmul.f32 1.442695, %v1368_v37 }
 0x733   : > { %1805 = vpow2.f32 %v1372_v38 }
 0x734   : > { %1807 = vpow2.f32 %v1370_v39 }
 0x73d   : > { %v1806_v40 = vpop.eup %1805 }
 0x73e   : > { %v1808_v41 = vpop.eup %1807  ;;  %v1609_v42 = vadd.f32 -1.0, %v1806_v40 }
 0x73f   : > { %v1608_v43 = vadd.f32 -1.0, %v1808_v41 }
 0x740   : > { %v1377_v21 = vsel %vm1367_vm7, %v1363_v33, %v1609_v42 }
 0x741   : > { %v1379_v49 = vadd.f32 %v1377_v21, %v2198_v30  ;;  %v1376_v12 = vsel %vm1366_vm8, %v1358_v35, %v1608_v43 }
 0x742   : > { %v1378_v50 = vadd.f32 %v1376_v12, %v2203_v46 }
 0x743   : > { %1381 = vst.msk [vmem:[#allocation2 + $0x28] sm:$0xff] %vm493_vm0, %v1379_v49 }
 0x744   : > { %1380 = vst.msk [vmem:[#allocation2 + $0x20] sm:$0xff] %vm493_vm0, %v1378_v50 }
 0x74b   : > { %v1387_v51 = vld [vmem:[#allocation2 + $0x21] ss:$2 sm:$0xff]  ;;  %v1385_v52 = vld [vmem:[#allocation2 + $0x20] ss:$2 sm:$0xff] }
 0x74c   : > { %1395 = vrot.lane.b32.xlu1 %v1387_v51, %s2345_s16  ;;  %1391 = vrot.lane.b32.xlu0 %v1385_v52, %s2348_s0  ;;  %v1389_v53 = vld [vmem:[#allocation2 + $0x22] ss:$2 sm:$0xff]  ;;  %v1383_v46 = vld [vmem:[#allocation2 + $0x1f] ss:$2 sm:$0xff] }
 0x750   : > { %1399 = vrot.lane.b32.xlu0 %v1389_v53, %s2347_s24  ;;  %s485_s24 = sand.u32 1, %s1865_s19  }
 0x751   : > { %s1571_s0 = sshll.u32 %s485_s24, 3  ;;  %s1495_s16 = scalar_lea.sflag [#allocation4], %s485_s24 }
 0x752   : > { %s487_s17 = scalar_lea.vmem [#allocation3], %s1571_s0  ;;  %s1815_s0 = sshll.u32 %s1885_s26, 4  ;;  %s1816_s0 = int_to_ptr.vmem [resolvable:$false] %s1815_s0 }
 0x753   : > { %s1508_s27 = sshll.u32 %s487_s17, 4  ;;  %s1817_s30 = scalar_lea.vmem %s1816_s0, 256  ;;  %s2265_s27 = int_to_ptr.vmem [resolvable:$true] %s1508_s27 }
 0x754   : > { %s1811_s22 = scalar_lea.vmem %s2265_s27, 128  ;;  %p1818_p0 = scmp.lt.s32.totalorder %s2265_s27, %s1816_s0 }
 0x755   : > { %p1812_p11 = scmp.ne.s32.totalorder %s2265_s27, %s1811_s22  ;;  %p1819_p1 = scmp.lt.s32.totalorder %s1817_s30, %s1811_s22 }
 0x757   : > { %p1813_p12 = pnand %p1812_p11, %p2004_p5  ;;  %p1820_p2 = por %p1819_p1, %p1818_p0 }
 0x759   : > { %p1814_p13 = pneg %p1813_p12 }
 0x75b   : > { %p1821_p3 = pnand %p1820_p2, %p1814_p13 }
 0x7be   : > { %v1392_v30 = vpop.permute.xlu0 %1391  ;;  %v1396_v54 = vpop.permute.xlu1 %1395 }
 0x7bf   : > { %v1402_v55 = vsel %vm493_vm0, %v1383_v46, %v1392_v30 }
 0x7c0   : > { %v1403_v57 = vsel %vm572_vm4, %v1402_v55, %v1396_v54 }
 0x7c2   : > { %v1400_v56 = vpop.permute.xlu0 %1399 }
 0x7c3   : > { %v1404_v0 = vsel %vm575_vm5, %v1403_v57, %v1400_v56 }
 0x7c4   : > { %1701 = vmatmul.mubr.msk.f32.vlgmr.msra.gmra.mrb[6].mxu0 %vm578_vm6, %v1404_v0 }
 0x897   : > { %v1483_v59 = vpop.f32.mrb[6].mxu0 }
 0x898   : > { %v1484_v60 = vadd.f32 %v1610_v58, %v1483_v59  ;;  %v1702_v61 = vpop.f32.mrb[7].mxu0 }
 0x89a   : > { %v1488_v62 = vmin.f32 %v1484_v60, 0.0  ;;  %vm1487_vm0 = vcmp.gt.f32.partialorder %v1484_v60, 0.0 }
 0x89c   : > { %v1489_v63 = vmul.f32 1.442695, %v1488_v62 }
 0x89e   : > { %1809 = vpow2.f32 %v1489_v63 }
 0x8a8   : > { %v1810_v1 = vpop.eup %1809 }
 0x8a9   : > { %v1612_v2 = vadd.f32 -1.0, %v1810_v1 }
 0x8ab   : > { %v1492_v3 = vsel %vm1487_vm0, %v1484_v60, %v1612_v2 }
 0x8ac   : > { %1493 = vst.msk [vmem:[%s487_s17] sm:$0xff] %vm572_vm4, %v1492_v3 }
 0x8ad   : > { %1824 = shalt.err (!%p1821_p3)
}
 0x8ae   : > { %s1825_s24 = scalar_lea.hbm %s2263_s23, 128  ;;  %s1829_s20 = scalar_lea.hbm %s2321_s15, 256 }
 0x8af   : > { %p1826_p4 = scmp.ne.s32.totalorder %s2263_s23, %s1825_s24  ;;  %p1830_p9 = scmp.lt.u32.totalorder %s2263_s23, %s2321_s15 }
 0x8b0   : > { %p1831_p10 = scmp.lt.u32.totalorder %s1829_s20, %s1825_s24  ;;  %p1833_p12 = scmp.lt.u32.totalorder %s1825_s24, %s2263_s23 }
 0x8b1   : > { %p1827_p7 = pnand %p1826_p4, %p2004_p5 }
 0x8b2   : > { %p1832_p11 = por %p1831_p10, %p1830_p9 }
 0x8b3   : > { %p1828_p8 = pneg %p1827_p7 }
 0x8b4   : > { %p1834_p13 = por %p1833_p12, %p1832_p11 }
 0x8b6   : > { %p1835_p0 = pnand %p1834_p13, %p1828_p8 }
 0x8b8   : > { %1838 = shalt.err (!%p1835_p0)
}
 0x8b9   : > { %1736 = dma.vmem_to_hbm [thread:$0]  (%p2004_p5), %s2265_s27, 128, %s2263_s23, %s1495_s16  }
 0x8ba PF: > { %p1742_p1 = scmp.ge.s32.totalorder %s1873_s21, 2  ;;  %s1520_s22 = sand.u32 1, %s1861_s18  }
 0x8bb   : > { %s1521_s30 = scalar_lea.sflag [#allocation4], %s1520_s22 }
 0x8bc   : > { %p1739_p2 = pnand %p1742_p1, %p2008_p6 }
 0x8be   : > { %1856 = dma.done.wait (!%p1739_p2), %s1521_s30, 128  }
 0x8bf   : > { %1858 = vsyncadd (!%p1739_p2), %s1521_s30, 4294967168  ;;  %s2351_s21 = sld [smem:[#allocation7_spill]]  ;;  %s2352_s24 = sld [smem:[#allocation6_spill]] }
 0x8c0   : > { %s2353_s20 = sld [smem:[#allocation8_spill]]  ;;  %s2354_s18 = smov %s1865_s19 }
 0x8c5   : > { %p25_p3 = scmp.ge.s32.totalorder %s2351_s21, 4   ;;  %s2355_s19 = smov %s2352_s24 }
 0x8c7   :  { %27 = sbr.rel (!%p25_p3) target bundleno = 5 (0x5), region = 119 }
 0x8ce   :  { %1526 = vsyncpa [#allocation4], 1 }
 0x8cf   :  { %1528 = vsyncpa [#allocation4 + $0x1], 1 }

</bundles_post_ra>
